<compile_context>
chip_gen: v7x
topology: tpu7x:2x2x1
jax: 0.10.0
libtpu: 0.0.40
codegen_flags: <defaults>
</compile_context>

<pallas_src>
import jax
import jax.numpy as jnp
import numpy as np
from jax.experimental import pallas as pl
from jax.experimental.pallas import tpu as pltpu


def _round_up(x, m):
    return ((x + m - 1) // m) * m


def _conv_block_kernel(x_ref, w_ref, scale_ref, shift_ref, alpha_ref, o_ref):
    # x_ref : [1, TM, Kd_pad]        (im2col patches for this group / M-tile)
    # w_ref : [1, Kd_pad, opg_pad]   (folded conv weights for this group)
    # scale/shift/alpha : [1, 1, opg_pad]
    # o_ref : [1, TM, opg_pad]
    x = x_ref[0]
    w = w_ref[0]
    y = jnp.dot(x, w, preferred_element_type=jnp.float32)   # single MXU matmul
    y = y * scale_ref[0] + shift_ref[0]                      # BatchNorm2d (eval)
    o_ref[0] = jnp.where(y >= 0.0, y, y * alpha_ref[0])      # PReLU (per-channel)


def conv_block_forward(x_nchw, weight, gamma, beta, running_mean, running_var,
                       prelu_alpha, *, stride=(1, 1), padding=(0, 0),
                       groups=1, eps=1e-5, tm=256,
                       compute_dtype=jnp.float32):
    """Forward pass of Conv_block.

    x_nchw      : [N, Cin, H, W]              (PyTorch layout)
    weight      : [Cout, Cin//groups, KH, KW] (PyTorch OIHW, bias=False)
    gamma/beta/running_mean/running_var : [Cout]  (BatchNorm2d, eval mode)
    prelu_alpha : [Cout]                      (PReLU per-channel slope)
    compute_dtype: dtype of the matmul inputs (use jnp.bfloat16 on v6e/v7x for
                   ~2x MXU throughput; accumulation stays fp32 either way).
    returns     : [N, Cout, Ho, Wo]
    """
    N, Cin, H, W = x_nchw.shape
    Cout, cpg, KH, KW = weight.shape
    assert Cin == cpg * groups and Cout % groups == 0
    opg = Cout // groups
    sh, sw = stride
    ph, pw = padding
    Ho = (H + 2 * ph - KH) // sh + 1
    Wo = (W + 2 * pw - KW) // sw + 1
    M = N * Ho * Wo
    Kd = KH * KW * cpg

    # ---- padded / lane-friendly sizes ----
    TM = min(tm, _round_up(M, 8))          # M-tile (multiple of 8 sublanes)
    M_pad = _round_up(M, TM)
    Kd_pad = _round_up(Kd, 8)              # contraction dim, sublane aligned
    opg_pad = _round_up(opg, 128)          # lane-dense output channels

    # ---- glue: layout conversion, spatial padding, im2col (plain JAX) ----
    x_nhwc = jnp.transpose(x_nchw, (0, 2, 3, 1)).astype(jnp.float32)
    x_sp = jnp.pad(x_nhwc, ((0, 0), (ph, ph), (pw, pw), (0, 0)))

    taps = []
    for kh in range(KH):
        for kw in range(KW):
            taps.append(x_sp[:, kh:kh + (Ho - 1) * sh + 1:sh,
                              kw:kw + (Wo - 1) * sw + 1:sw, :])
    # [N, Ho, Wo, KH*KW, Cin] -> [groups, M, KH*KW*cpg]
    patches = jnp.stack(taps, axis=-2).reshape(M, KH * KW, groups, cpg)
    patches = jnp.transpose(patches, (2, 0, 1, 3)).reshape(groups, M, Kd)
    patches = jnp.pad(patches, ((0, 0), (0, M_pad - M), (0, Kd_pad - Kd)))
    patches = patches.astype(compute_dtype)

    # OIHW -> [groups, KH*KW*cpg, opg]  (K ordering matches the patches above)
    w_t = weight.astype(jnp.float32).reshape(groups, opg, cpg, KH, KW)
    w_t = jnp.transpose(w_t, (0, 3, 4, 2, 1)).reshape(groups, Kd, opg)
    w_t = jnp.pad(w_t, ((0, 0), (0, Kd_pad - Kd), (0, opg_pad - opg)))
    w_t = w_t.astype(compute_dtype)

    # Fold eval-mode BatchNorm into per-channel scale/shift (fp32 epilogue).
    scale = (gamma / jnp.sqrt(running_var + eps)).astype(jnp.float32)
    shift = (beta - running_mean * scale).astype(jnp.float32)

    def per_group_param(p):
        p = p.astype(jnp.float32).reshape(groups, opg)
        p = jnp.pad(p, ((0, 0), (0, opg_pad - opg)))
        return p.reshape(groups, 1, opg_pad)

    scale_g = per_group_param(scale)
    shift_g = per_group_param(shift)
    alpha_g = per_group_param(prelu_alpha)

    # ---- Pallas call: grid over (group, M-tile) ----
    num_m = M_pad // TM
    grid = (groups, num_m)

    out = pl.pallas_call(
        _conv_block_kernel,
        out_shape=jax.ShapeDtypeStruct((groups, M_pad, opg_pad), jnp.float32),
        grid_spec=pltpu.PrefetchScalarGridSpec(
            num_scalar_prefetch=0,
            grid=grid,
            in_specs=[
                pl.BlockSpec((1, TM, Kd_pad), lambda g, m: (g, m, 0)),
                pl.BlockSpec((1, Kd_pad, opg_pad), lambda g, m: (g, 0, 0)),
                pl.BlockSpec((1, 1, opg_pad), lambda g, m: (g, 0, 0)),
                pl.BlockSpec((1, 1, opg_pad), lambda g, m: (g, 0, 0)),
                pl.BlockSpec((1, 1, opg_pad), lambda g, m: (g, 0, 0)),
            ],
            out_specs=pl.BlockSpec((1, TM, opg_pad), lambda g, m: (g, m, 0)),
        ),
        compiler_params=pltpu.CompilerParams(
            dimension_semantics=("parallel", "parallel"),
            vmem_limit_bytes=32 * 1024 * 1024,
        ),
    )(patches, w_t, scale_g, shift_g, alpha_g)

    # [groups, M_pad, opg_pad] -> [M, Cout] -> NHWC -> NCHW
    out = out[:, :M, :opg]
    out = jnp.transpose(out, (1, 0, 2)).reshape(M, Cout)
    return jnp.transpose(out.reshape(N, Ho, Wo, Cout), (0, 3, 1, 2))


def _reference(x_nchw, weight, gamma, beta, running_mean, running_var,
               prelu_alpha, *, stride, padding, groups, eps=1e-5):
    y = jax.lax.conv_general_dilated(
        x_nchw.astype(jnp.float32), weight.astype(jnp.float32),
        window_strides=stride,
        padding=[(padding[0], padding[0]), (padding[1], padding[1])],
        dimension_numbers=("NCHW", "OIHW", "NCHW"),
        feature_group_count=groups)
    scale = gamma / jnp.sqrt(running_var + eps)
    shift = beta - running_mean * scale
    y = y * scale.reshape(1, -1, 1, 1) + shift.reshape(1, -1, 1, 1)
    a = prelu_alpha.reshape(1, -1, 1, 1)
    return jnp.where(y >= 0.0, y, y * a)


def _run_case(key, *, N, Cin, H, W, Cout, KH, KW, stride, padding, groups):
    k_x, k_w, k_g, k_b, k_m, k_v, k_a = jax.random.split(key, 7)
    x = jax.random.normal(k_x, (N, Cin, H, W), dtype=jnp.float32)
    fan_in = (Cin // groups) * KH * KW
    weight = jax.random.normal(
        k_w, (Cout, Cin // groups, KH, KW), dtype=jnp.float32) / np.sqrt(fan_in)
    gamma = 1.0 + 0.1 * jax.random.normal(k_g, (Cout,), dtype=jnp.float32)
    beta = 0.1 * jax.random.normal(k_b, (Cout,), dtype=jnp.float32)
    running_mean = 0.1 * jax.random.normal(k_m, (Cout,), dtype=jnp.float32)
    running_var = jnp.abs(1.0 + 0.1 * jax.random.normal(
        k_v, (Cout,), dtype=jnp.float32))
    prelu_alpha = 0.25 + 0.05 * jax.random.normal(k_a, (Cout,), dtype=jnp.float32)

    out = conv_block_forward(x, weight, gamma, beta, running_mean, running_var,
                             prelu_alpha, stride=stride, padding=padding,
                             groups=groups)
    out = jax.block_until_ready(out)

    ref = _reference(x, weight, gamma, beta, running_mean, running_var,
                     prelu_alpha, stride=stride, padding=padding, groups=groups)
    ref = jax.block_until_ready(ref)

    sh, sw = stride
    ph, pw = padding
    Ho = (H + 2 * ph - KH) // sh + 1
    Wo = (W + 2 * pw - KW) // sw + 1
    assert out.shape == (N, Cout, Ho, Wo), out.shape
    np.testing.assert_allclose(np.asarray(out), np.asarray(ref),
                               rtol=1e-4, atol=1e-4)


if __name__ == "__main__":
    key = jax.random.PRNGKey(0)
    k1, k2 = jax.random.split(key)

    # Conv_block(in_c=4, out_c=8, kernel=(3,3), stride=(1,1), padding=(1,1))
    _run_case(k1, N=2, Cin=4, H=16, W=16, Cout=8, KH=3, KW=3,
              stride=(1, 1), padding=(1, 1), groups=1)

    # Depthwise-style Conv_block(in_c=8, out_c=8, kernel=(3,3), stride=(2,2),
    #                            padding=(1,1), groups=8)
    _run_case(k2, N=2, Cin=8, H=16, W=16, Cout=8, KH=3, KW=3,
              stride=(2, 2), padding=(1, 1), groups=8)

    print("KERNEL_OK")
</pallas_src>

<mosaic_0001>
module attributes {stable_mosaic.version = 11 : i64} {
  func.func @_conv_block_kernel(%arg0: i32, %arg1: i32, %arg2: memref<1x256x40xf32, #tpu.memory_space<vmem>>, %arg3: memref<1x40x128xf32, #tpu.memory_space<vmem>>, %arg4: memref<1x1x128xf32, #tpu.memory_space<vmem>>, %arg5: memref<1x1x128xf32, #tpu.memory_space<vmem>>, %arg6: memref<1x1x128xf32, #tpu.memory_space<vmem>>, %arg7: memref<1x256x128xf32, #tpu.memory_space<vmem>>) attributes {dimension_semantics = [#tpu.dimension_semantics<parallel>, #tpu.dimension_semantics<parallel>], iteration_bounds = array<i64: 1, 2>, scalar_prefetch = 0 : i64, scratch_operands = 0 : i64, tpu.core_type = #tpu.core_type<tc>, window_params = [{transform_indices = @transform_0, window_bounds = array<i64: 1, 256, 40>}, {transform_indices = @transform_1, window_bounds = array<i64: 1, 40, 128>}, {transform_indices = @transform_2, window_bounds = array<i64: 1, 1, 128>}, {transform_indices = @transform_3, window_bounds = array<i64: 1, 1, 128>}, {transform_indices = @transform_4, window_bounds = array<i64: 1, 1, 128>}, {transform_indices = @transform_5, window_bounds = array<i64: 1, 256, 128>}]} {
    %c0 = arith.constant 0 : index
    %c0_0 = arith.constant 0 : index
    %c0_1 = arith.constant 0 : index
    %0 = vector.load %arg2[%c0, %c0_0, %c0_1] : memref<1x256x40xf32, #tpu.memory_space<vmem>>, vector<1x256x40xf32>
    %1 = vector.shape_cast %0 : vector<1x256x40xf32> to vector<256x40xf32>
    %c0_2 = arith.constant 0 : index
    %c0_3 = arith.constant 0 : index
    %c0_4 = arith.constant 0 : index
    %2 = vector.load %arg3[%c0_2, %c0_3, %c0_4] : memref<1x40x128xf32, #tpu.memory_space<vmem>>, vector<1x40x128xf32>
    %3 = vector.shape_cast %2 : vector<1x40x128xf32> to vector<40x128xf32>
    %cst = arith.constant dense<0.000000e+00> : vector<256x128xf32>
    %4 = tpu.matmul %1, %3, %cst {dimension_numbers = #tpu.dot_dimension_numbers<[1], [0], [0], [1], [0, 0, 1, 1], [], []>} : vector<256x40xf32>, vector<40x128xf32>, vector<256x128xf32> -> vector<256x128xf32>
    %c0_5 = arith.constant 0 : index
    %c0_6 = arith.constant 0 : index
    %c0_7 = arith.constant 0 : index
    %5 = vector.load %arg4[%c0_5, %c0_6, %c0_7] : memref<1x1x128xf32, #tpu.memory_space<vmem>>, vector<1x1x128xf32>
    %6 = vector.shape_cast %5 : vector<1x1x128xf32> to vector<1x128xf32>
    %7 = vector.broadcast %6 : vector<1x128xf32> to vector<256x128xf32>
    %8 = arith.mulf %4, %7 : vector<256x128xf32>
    %c0_8 = arith.constant 0 : index
    %c0_9 = arith.constant 0 : index
    %c0_10 = arith.constant 0 : index
    %9 = vector.load %arg5[%c0_8, %c0_9, %c0_10] : memref<1x1x128xf32, #tpu.memory_space<vmem>>, vector<1x1x128xf32>
    %10 = vector.shape_cast %9 : vector<1x1x128xf32> to vector<1x128xf32>
    %11 = vector.broadcast %10 : vector<1x128xf32> to vector<256x128xf32>
    %12 = arith.addf %8, %11 : vector<256x128xf32>
    %cst_11 = arith.constant 0.000000e+00 : f32
    %13 = vector.broadcast %cst_11 : f32 to vector<256x128xf32>
    %14 = arith.cmpf oge, %12, %13 : vector<256x128xf32>
    %c0_12 = arith.constant 0 : index
    %c0_13 = arith.constant 0 : index
    %c0_14 = arith.constant 0 : index
    %15 = vector.load %arg6[%c0_12, %c0_13, %c0_14] : memref<1x1x128xf32, #tpu.memory_space<vmem>>, vector<1x1x128xf32>
    %16 = vector.shape_cast %15 : vector<1x1x128xf32> to vector<1x128xf32>
    %17 = vector.broadcast %16 : vector<1x128xf32> to vector<256x128xf32>
    %18 = arith.mulf %12, %17 : vector<256x128xf32>
    %19 = arith.select %14, %12, %18 : vector<256x128xi1>, vector<256x128xf32>
    %c0_15 = arith.constant 0 : index
    %c0_16 = arith.constant 0 : index
    %c0_17 = arith.constant 0 : index
    %20 = vector.load %arg7[%c0_15, %c0_16, %c0_17] : memref<1x256x128xf32, #tpu.memory_space<vmem>>, vector<1x256x128xf32>
    %21 = vector.shape_cast %20 : vector<1x256x128xf32> to vector<256x128xf32>
    %22 = vector.shape_cast %19 : vector<256x128xf32> to vector<1x256x128xf32>
    tpu.vector_store %arg7[%c0_15, %c0_16, %c0_17], %22 {strides = array<i32>} : memref<1x256x128xf32, #tpu.memory_space<vmem>>, vector<1x256x128xf32>,
    return
  }
  func.func @transform_0(%arg0: i32, %arg1: i32) -> (i32, i32, i32) {
    %c0_i32 = arith.constant 0 : i32
    %c0_i32_0 = arith.constant 0 : i32
    return %arg0, %arg1, %c0_i32 : i32, i32, i32
  }
  func.func @transform_1(%arg0: i32, %arg1: i32) -> (i32, i32, i32) {
    %c0_i32 = arith.constant 0 : i32
    %c0_i32_0 = arith.constant 0 : i32
    %c0_i32_1 = arith.constant 0 : i32
    return %arg0, %c0_i32, %c0_i32_0 : i32, i32, i32
  }
  func.func @transform_2(%arg0: i32, %arg1: i32) -> (i32, i32, i32) {
    %c0_i32 = arith.constant 0 : i32
    %c0_i32_0 = arith.constant 0 : i32
    %c0_i32_1 = arith.constant 0 : i32
    return %arg0, %c0_i32, %c0_i32_0 : i32, i32, i32
  }
  func.func @transform_3(%arg0: i32, %arg1: i32) -> (i32, i32, i32) {
    %c0_i32 = arith.constant 0 : i32
    %c0_i32_0 = arith.constant 0 : i32
    %c0_i32_1 = arith.constant 0 : i32
    return %arg0, %c0_i32, %c0_i32_0 : i32, i32, i32
  }
  func.func @transform_4(%arg0: i32, %arg1: i32) -> (i32, i32, i32) {
    %c0_i32 = arith.constant 0 : i32
    %c0_i32_0 = arith.constant 0 : i32
    %c0_i32_1 = arith.constant 0 : i32
    return %arg0, %c0_i32, %c0_i32_0 : i32, i32, i32
  }
  func.func @transform_5(%arg0: i32, %arg1: i32) -> (i32, i32, i32) {
    %c0_i32 = arith.constant 0 : i32
    %c0_i32_0 = arith.constant 0 : i32
    return %arg0, %arg1, %c0_i32 : i32, i32, i32
  }
}

</mosaic_0001>

<bundles_post_ra>
// kernel: tpu_custom_call.1
= control target key start
LH: loop header
LB: loop body
LE: loop exit
PB: predicated region body
PF: predicated region fallthrough
CT: control target
= control target key end

     0   :  { %10 = vsyncpa [#allocation3], 0  ;;  %s1711_s0 = inlined_call_operand.vmem [shape: f32[1,512,40], index: 0, kind: input, shape index: {}]   ;;  %s1712_s1 = inlined_call_operand.vmem [shape: f32[1,40,128], index: 1, kind: input, shape index: {}]   ;;  %s1713_s2 = inlined_call_operand.vmem [shape: f32[1,1,128], index: 2, kind: input, shape index: {}]   ;;  %s1714_s3 = inlined_call_operand.vmem [shape: f32[1,1,128], index: 3, kind: input, shape index: {}]   ;;  %s1715_s4 = inlined_call_operand.vmem [shape: f32[1,1,128], index: 4, kind: input, shape index: {}]   ;;  %s1716_s5 = inlined_call_operand.hbm [shape: f32[1,512,128], index: 5, kind: output, shape index: {}]  }
   0x1   :  { %12 = vsyncpa [#allocation3 + $0x1], 0  ;;  %s1366_s18 = smov 0   ;;  %s1368_s19 = smov 0  }
   0x2   :  { %s1370_s20 = smov 0   ;;  %s1372_s21 = smov 0  }
   0x3   :  { %s1374_s22 = smov 0   ;;  %s1376_s23 = smov 0  }
   0x4 LB: > { %s1034_s24 = sadd.s32 4294967295, %s1331_s23   ;;  %s1035_s25 = sadd.s32 4294967294, %s1331_s23   ;;  %s1331_s23 = sphi %s1376_s23, %s18_s23   ;;  %s1327_s22 = sphi %s1374_s22, %s1723_s22   ;;  %s1323_s21 = sphi %s1372_s21, %s1722_s21   ;;  %s1319_s20 = sphi %s1370_s20, %s1721_s20   ;;  %s1315_s19 = sphi %s1368_s19, %s1720_s19   ;;  %s1311_s18 = sphi %s1366_s18, %s1719_s18  }
   0x5   : > { %s27_s26 = sadd.s32 1, %s1327_s22  ;;  %s171_s27 = sadd.s32 1, %s1319_s20 }
   0x6   : > { %p28_p0 = scmp.ge.s32.totalorder %s27_s26, 2  ;;  %p181_p1 = scmp.ne.s32.totalorder %s1319_s20, %s1315_s19 }
   0x7   : > { %p182_p2 = scmp.eq.s32.totalorder %s1034_s24, 1  ;;  %p187_p3 = scmp.ne.s32.totalorder %s1315_s19, %s1311_s18 }
   0x8   : > { %s1725_s26 = smov (%p28_p0, %s27_s26), 0  ;;  %p188_p5 = scmp.eq.s32.totalorder %s1035_s25, 1 }
   0x9   : > { %p1406_p4 = por %p182_p2, %p181_p1  ;;  %s167_s29 = ssub.s32 %s1327_s22, %s1725_s26 }
   0xa   : > { %p1042_p6 = scmp.ge.s32.totalorder %s1331_s23, 1  ;;  %p169_p7 = scmp.eq.s32.totalorder %s167_s29, 0 }
   0xb   : > { %p1413_p8 = por %p188_p5, %p187_p3  ;;  %p245_p9 = scmp.lt.s32.totalorder %s1331_s23, 3 }
   0xc   : > { %s1419_s6 = scalar_select %p169_p7, %s1319_s20, %s171_s27  }
   0xd   : > { %p246_p10 = pnand %p1042_p6, %p245_p9 }
   0xe   : > { %v348_v0 = vld [vmem:[%s1712_s1] sm:$0xff] (!%p246_p10)  ;;  %v349_v1 = vld [vmem:[%s1712_s1 + $0x8] sm:$0xff] (!%p246_p10)  ;;  %v350_v2 = vld [vmem:[%s1712_s1 + $0x10] sm:$0xff] (!%p246_p10)  ;;  %s1044_s13 = sshll.u32 (!%p246_p10), %s1323_s21, 5  ;;  %vm353_vm0 = vcmask (!%p246_p10), 326656   ;;  %s288_s9 = sand.u32 (!%p246_p10), 1, %s1315_s19  }
   0xf   : > { %249 = sbr.rel (%p246_p10) target bundleno = 300 (0x12c), region = 40  ;;  %v1182_v3 = vpack.c.bf16 (!%p246_p10), %v349_v1, %v348_v0  ;;  %v351_v4 = vld [vmem:[%s1712_s1 + $0x18] sm:$0xff] (!%p246_p10)  ;;  %p294_p11 = scmp.lt.s32.totalorder (!%p246_p10), %s1044_s13, 63  ;;  %v352_v6 = vld [vmem:[%s1712_s1 + $0x20] sm:$0xff] (!%p246_p10) }
  0x10   : > { %v1186_v5 = vpack.c.bf16 (!%p246_p10), %v351_v4, %v350_v2  ;;  %v1509_v39 = vld [vmem:[%s1713_s2] ss:$0 sm:$0xff] (!%p246_p10)  ;;  %s1043_s12 = sshll.u32 (!%p246_p10), %s288_s9, 8  ;;  %s1665_s27 = scalar_lea.sflag (!%p246_p10), [#allocation3], %s288_s9 }
  0x11   : > { %1183 = vmatprep.subr.bf16.mxu0 (!%p246_p10), %v1182_v3  ;;  %1190 = vmatprep.subr.bf16.mxu1 (!%p246_p10), %v1182_v3  ;;  %v1515_v41 = vld [vmem:[%s1714_s3] ss:$0 sm:$0xff] (!%p246_p10)  ;;  %s1538_s15 = scalar_lea.vmem (!%p246_p10), [#allocation2], %s1043_s12  ;;  %s1333_s7 = smov (!%p246_p10), [#allocation2]  }
  0x12   : > { %1185 = vmatpush3.bf16.msra.mxu0 (!%p246_p10), %v1182_v3  ;;  %1193 = vmatpush3.bf16.msra.mxu1 (!%p246_p10), %v1182_v3  ;;  %v1524_v47 = vld [vmem:[%s1715_s4] ss:$0 sm:$0xff] (!%p246_p10)  ;;  %s904_s17 = sshll.u32 (!%p246_p10), %s1538_s15, 4  ;;  %s1257_s8 = sshll.u32 (!%p246_p10), %s1333_s7, 4  ;;  %s1657_s17 = int_to_ptr.vmem [resolvable:$true] %s904_s17  ;;  %s1258_s8 = int_to_ptr.vmem [resolvable:$false] %s1257_s8 }
  0x13   : > { %1187 = vmatprep.subr.bf16.mxu0 (!%p246_p10), %v1186_v5  ;;  %1191 = vmatprep.subr.bf16.mxu1 (!%p246_p10), %v1186_v5  ;;  %s1259_s10 = scalar_lea.vmem (!%p246_p10), %s1258_s8, 8192  ;;  %p1260_p1 = scmp.lt.s32.totalorder (!%p246_p10), %s1657_s17, %s1258_s8 }
  0x16   : > { %s1727_s13 = smov (!%p294_p11, %s1044_s13), 63  ;;  %1189 = vmatpush3.bf16.msra.mxu0 %v1186_v5  ;;  %1194 = vmatpush3.bf16.msra.mxu1 %v1186_v5 }
  0x17   : > { %s1045_s16 = sshll.u32 %s1727_s13, 3  ;;  %1132 = vmatprep.subr.mxu0 %v352_v6  ;;  %1192 = vmatprep.subr.mxu1 %v352_v6 }
  0x18   : > { %s1440_s29 = scalar_lea.vmem %s1711_s0, %s1045_s16  ;;  %s1086_s16 = sshll.u32 %s1323_s21, 12 }
  0x19   : > { %v316_v7 = vld [vmem:[%s1440_s29] sm:$0xff]  ;;  %v317_v9 = vld [vmem:[%s1440_s29 + $0x8] sm:$0xff]  ;;  %v318_v11 = vld [vmem:[%s1440_s29 + $0x10] sm:$0xff]  ;;  %s1655_s25 = scalar_lea.hbm %s1716_s5, %s1086_s16 }
  0x1a   : > { %v332_v8 = vld [vmem:[%s1440_s29 + $0x80] sm:$0xff]  ;;  %1134 = vmatprep.mubr.msk.f32.mxu0 %vm353_vm0, %v316_v7  ;;  %v333_v10 = vld [vmem:[%s1440_s29 + $0x88] sm:$0xff]  ;;  %v334_v12 = vld [vmem:[%s1440_s29 + $0x90] sm:$0xff]  ;;  %1133 = vmatpush3.msra.mxu0 %v352_v6 }
  0x1b   : > { %1158 = vmatprep.mubr.msk.f32.mxu1 %vm353_vm0, %v332_v8  ;;  %1195 = vmatpush3.msra.mxu1 %v352_v6  ;;  %v319_v13 = vld [vmem:[%s1440_s29 + $0x18] sm:$0xff]  ;;  %v320_v15 = vld [vmem:[%s1440_s29 + $0x20] sm:$0xff]  ;;  %v321_v17 = vld [vmem:[%s1440_s29 + $0x28] sm:$0xff] }
  0x1c   : > { %1135 = vmatmul.mubr.msk.f32.vlgmr.msra.gmra.mrb[0].mxu0 %vm353_vm0, %v317_v9  ;;  %1159 = vmatmul.mubr.msk.f32.vlgmr.msra.gmra.mrb[0].mxu1 %vm353_vm0, %v333_v10  ;;  %v335_v14 = vld [vmem:[%s1440_s29 + $0x98] sm:$0xff]  ;;  %v336_v16 = vld [vmem:[%s1440_s29 + $0xa0] sm:$0xff]  ;;  %v337_v18 = vld [vmem:[%s1440_s29 + $0xa8] sm:$0xff] }
  0x1d   : > { %1137 = vmatprep.mubr.msk.f32.mxu0 %vm353_vm0, %v318_v11  ;;  %1161 = vmatprep.mubr.msk.f32.mxu1 %vm353_vm0, %v334_v12  ;;  %v322_v19 = vld [vmem:[%s1440_s29 + $0x30] sm:$0xff]  ;;  %v323_v21 = vld [vmem:[%s1440_s29 + $0x38] sm:$0xff]  ;;  %v324_v23 = vld [vmem:[%s1440_s29 + $0x40] sm:$0xff] }
  0x1e   : > { %v338_v20 = vld [vmem:[%s1440_s29 + $0xb0] sm:$0xff]  ;;  %v339_v22 = vld [vmem:[%s1440_s29 + $0xb8] sm:$0xff]  ;;  %v340_v24 = vld [vmem:[%s1440_s29 + $0xc0] sm:$0xff] }
  0x1f   : > { %v325_v25 = vld [vmem:[%s1440_s29 + $0x48] sm:$0xff]  ;;  %v326_v27 = vld [vmem:[%s1440_s29 + $0x50] sm:$0xff]  ;;  %v327_v29 = vld [vmem:[%s1440_s29 + $0x58] sm:$0xff] }
  0x20   : > { %1138 = vmatmul.mubr.msk.f32.gmra.mrb[2].mxu0 %vm353_vm0, %v319_v13  ;;  %1162 = vmatmul.mubr.msk.f32.gmra.mrb[2].mxu1 %vm353_vm0, %v335_v14  ;;  %v341_v26 = vld [vmem:[%s1440_s29 + $0xc8] sm:$0xff]  ;;  %v342_v28 = vld [vmem:[%s1440_s29 + $0xd0] sm:$0xff]  ;;  %v343_v30 = vld [vmem:[%s1440_s29 + $0xd8] sm:$0xff] }
  0x21   : > { %1140 = vmatprep.mubr.msk.f32.mxu0 %vm353_vm0, %v320_v15  ;;  %1164 = vmatprep.mubr.msk.f32.mxu1 %vm353_vm0, %v336_v16  ;;  %v328_v31 = vld [vmem:[%s1440_s29 + $0x60] sm:$0xff]  ;;  %v329_v33 = vld [vmem:[%s1440_s29 + $0x68] sm:$0xff]  ;;  %v330_v35 = vld [vmem:[%s1440_s29 + $0x70] sm:$0xff] }
  0x22   : > { %v344_v32 = vld [vmem:[%s1440_s29 + $0xe0] sm:$0xff]  ;;  %v345_v34 = vld [vmem:[%s1440_s29 + $0xe8] sm:$0xff]  ;;  %v346_v36 = vld [vmem:[%s1440_s29 + $0xf0] sm:$0xff] }
  0x23   : > { %v331_v37 = vld [vmem:[%s1440_s29 + $0x78] sm:$0xff] }
  0x24   : > { %1141 = vmatmul.mubr.msk.f32.gmra.mrb[4].mxu0 %vm353_vm0, %v321_v17  ;;  %1165 = vmatmul.mubr.msk.f32.gmra.mrb[4].mxu1 %vm353_vm0, %v337_v18  ;;  %v347_v38 = vld [vmem:[%s1440_s29 + $0xf8] sm:$0xff]  ;;  %s1253_s29 = scalar_lea.vmem %s1657_s17, 4096 }
  0x25   : > { %1143 = vmatprep.mubr.msk.f32.mxu0 %vm353_vm0, %v322_v19  ;;  %1167 = vmatprep.mubr.msk.f32.mxu1 %vm353_vm0, %v338_v20  ;;  %p1254_p12 = scmp.ne.s32.totalorder %s1657_s17, %s1253_s29  ;;  %p1261_p2 = scmp.lt.s32.totalorder %s1259_s10, %s1253_s29 }
  0x27   : > { %p1255_p13 = pnand %p1254_p12, %p1406_p4  ;;  %p1262_p3 = por %p1261_p2, %p1260_p1 }
  0x28   : > { %1144 = vmatmul.mubr.msk.f32.gmra.mrb[6].mxu0 %vm353_vm0, %v323_v21  ;;  %1168 = vmatmul.mubr.msk.f32.gmra.mrb[6].mxu1 %vm353_vm0, %v339_v22 }
  0x29   : > { %1146 = vmatprep.mubr.msk.f32.mxu0 %vm353_vm0, %v324_v23  ;;  %1170 = vmatprep.mubr.msk.f32.mxu1 %vm353_vm0, %v340_v24  ;;  %p1256_p0 = pneg %p1255_p13 }
  0x2b   : > { %p1263_p5 = pnand %p1262_p3, %p1256_p0 }
  0x2c   : > { %1147 = vmatmul.mubr.msk.f32.gmra.mrb[8].mxu0 %vm353_vm0, %v325_v25  ;;  %1171 = vmatmul.mubr.msk.f32.gmra.mrb[8].mxu1 %vm353_vm0, %v341_v26 }
  0x2d   : > { %1149 = vmatprep.mubr.msk.f32.mxu0 %vm353_vm0, %v326_v27  ;;  %1173 = vmatprep.mubr.msk.f32.mxu1 %vm353_vm0, %v342_v28 }
  0x30   : > { %1150 = vmatmul.mubr.msk.f32.gmra.mrb[10].mxu0 %vm353_vm0, %v327_v29  ;;  %1174 = vmatmul.mubr.msk.f32.gmra.mrb[10].mxu1 %vm353_vm0, %v343_v30 }
  0x31   : > { %1152 = vmatprep.mubr.msk.f32.mxu0 %vm353_vm0, %v328_v31  ;;  %1176 = vmatprep.mubr.msk.f32.mxu1 %vm353_vm0, %v344_v32 }
  0x34   : > { %1153 = vmatmul.mubr.msk.f32.gmra.mrb[12].mxu0 %vm353_vm0, %v329_v33  ;;  %1177 = vmatmul.mubr.msk.f32.gmra.mrb[12].mxu1 %vm353_vm0, %v345_v34 }
  0x35   : > { %1155 = vmatprep.mubr.msk.f32.mxu0 %vm353_vm0, %v330_v35  ;;  %1179 = vmatprep.mubr.msk.f32.mxu1 %vm353_vm0, %v346_v36 }
  0x38   : > { %1156 = vmatmul.mubr.msk.f32.gmra.mrb[14].mxu0 %vm353_vm0, %v331_v37  ;;  %1180 = vmatmul.mubr.msk.f32.gmra.mrb[14].mxu1 %vm353_vm0, %v347_v38 }
  0xef   : > { %v1136_v40 = vpop.f32.mrb[0].mxu0  ;;  %v1160_v42 = vpop.f32.mrb[0].mxu1 }
  0xf0   : > { %v683_v43 = vmul.f32 %v1136_v40, %v1509_v39  ;;  %v699_v44 = vmul.f32 %v1160_v42, %v1509_v39  ;;  %v516_v45 = vpop.f32.mrb[1].mxu0  ;;  %v596_v46 = vpop.f32.mrb[1].mxu1 }
  0xf1   : > { %v682_v48 = vmul.f32 %v1509_v39, %v516_v45  ;;  %v698_v49 = vmul.f32 %v1509_v39, %v596_v46 }
  0xf2   : > { %v722_v50 = vadd.f32 %v1515_v41, %v683_v43  ;;  %v738_v51 = vadd.f32 %v1515_v41, %v699_v44 }
  0xf3   : > { %v721_v52 = vadd.f32 %v1515_v41, %v682_v48  ;;  %v737_v53 = vadd.f32 %v1515_v41, %v698_v49  ;;  %v1139_v54 = vpop.f32.mrb[2].mxu0  ;;  %v1163_v55 = vpop.f32.mrb[2].mxu1 }
  0xf4   : > { %vm754_vm1 = vcmp.ge.f32.partialorder %v722_v50, 0.0  ;;  %v793_v56 = vmul.f32 %v1524_v47, %v722_v50  ;;  %vm770_vm2 = vcmp.ge.f32.partialorder %v738_v51, 0.0  ;;  %v809_v57 = vmul.f32 %v1524_v47, %v738_v51  ;;  %v526_v58 = vpop.f32.mrb[3].mxu0  ;;  %v606_v59 = vpop.f32.mrb[3].mxu1 }
  0xf5   : > { %vm753_vm3 = vcmp.ge.f32.partialorder %v721_v52, 0.0  ;;  %v792_v60 = vmul.f32 %v1524_v47, %v721_v52  ;;  %vm769_vm4 = vcmp.ge.f32.partialorder %v737_v53, 0.0  ;;  %v808_v61 = vmul.f32 %v1524_v47, %v737_v53 }
  0xf6   : > { %v825_v62 = vsel %vm754_vm1, %v722_v50, %v793_v56  ;;  %v841_v63 = vsel %vm770_vm2, %v738_v51, %v809_v57  ;;  %v685_v0 = vmul.f32 %v1139_v54, %v1509_v39  ;;  %v701_v1 = vmul.f32 %v1163_v55, %v1509_v39 }
  0xf7   : > { %857 = vst [vmem:[%s1538_s15 + $0x8] sm:$0xff] %v825_v62  ;;  %873 = vst [vmem:[%s1538_s15 + $0x88] sm:$0xff] %v841_v63  ;;  %v824_v2 = vsel %vm753_vm3, %v721_v52, %v792_v60  ;;  %v840_v3 = vsel %vm769_vm4, %v737_v53, %v808_v61  ;;  %v684_v4 = vmul.f32 %v1509_v39, %v526_v58  ;;  %v1142_v6 = vpop.f32.mrb[4].mxu0  ;;  %v1166_v7 = vpop.f32.mrb[4].mxu1 }
  0xf8   : > { %v700_v5 = vmul.f32 %v1509_v39, %v606_v59  ;;  %856 = vst [vmem:[%s1538_s15] sm:$0xff] %v824_v2  ;;  %872 = vst [vmem:[%s1538_s15 + $0x80] sm:$0xff] %v840_v3  ;;  %v724_v8 = vadd.f32 %v1515_v41, %v685_v0  ;;  %v740_v9 = vadd.f32 %v1515_v41, %v701_v1  ;;  %v536_v12 = vpop.f32.mrb[5].mxu0  ;;  %v616_v13 = vpop.f32.mrb[5].mxu1 }
  0xf9   : > { %v687_v10 = vmul.f32 %v1142_v6, %v1509_v39  ;;  %v703_v11 = vmul.f32 %v1166_v7, %v1509_v39  ;;  %v723_v14 = vadd.f32 %v1515_v41, %v684_v4  ;;  %v686_v16 = vmul.f32 %v1509_v39, %v536_v12 }
  0xfa   : > { %v739_v15 = vadd.f32 %v1515_v41, %v700_v5  ;;  %v702_v17 = vmul.f32 %v1509_v39, %v616_v13  ;;  %vm756_vm5 = vcmp.ge.f32.partialorder %v724_v8, 0.0  ;;  %v795_v18 = vmul.f32 %v1524_v47, %v724_v8 }
  0xfb   : > { %vm772_vm6 = vcmp.ge.f32.partialorder %v740_v9, 0.0  ;;  %v811_v19 = vmul.f32 %v1524_v47, %v740_v9  ;;  %vm755_vm7 = vcmp.ge.f32.partialorder %v723_v14, 0.0  ;;  %v794_v20 = vmul.f32 %v1524_v47, %v723_v14  ;;  %v1145_v22 = vpop.f32.mrb[6].mxu0  ;;  %v1169_v23 = vpop.f32.mrb[6].mxu1 }
  0xfc   : > { %vm771_vm8 = vcmp.ge.f32.partialorder %v739_v15, 0.0  ;;  %v810_v21 = vmul.f32 %v1524_v47, %v739_v15  ;;  %v827_v24 = vsel %vm756_vm5, %v724_v8, %v795_v18  ;;  %v726_v26 = vadd.f32 %v1515_v41, %v687_v10  ;;  %v546_v28 = vpop.f32.mrb[7].mxu0  ;;  %v626_v29 = vpop.f32.mrb[7].mxu1 }
  0xfd   : > { %v843_v25 = vsel %vm772_vm6, %v740_v9, %v811_v19  ;;  %v742_v27 = vadd.f32 %v1515_v41, %v703_v11  ;;  %859 = vst [vmem:[%s1538_s15 + $0x18] sm:$0xff] %v827_v24  ;;  %v826_v30 = vsel %vm755_vm7, %v723_v14, %v794_v20  ;;  %v725_v32 = vadd.f32 %v1515_v41, %v686_v16 }
  0xfe   : > { %875 = vst [vmem:[%s1538_s15 + $0x98] sm:$0xff] %v843_v25  ;;  %v842_v31 = vsel %vm771_vm8, %v739_v15, %v810_v21  ;;  %v741_v33 = vadd.f32 %v1515_v41, %v702_v17  ;;  %858 = vst [vmem:[%s1538_s15 + $0x10] sm:$0xff] %v826_v30  ;;  %vm758_vm9 = vcmp.ge.f32.partialorder %v726_v26, 0.0  ;;  %v797_v34 = vmul.f32 %v1524_v47, %v726_v26 }
  0xff   : > { %874 = vst [vmem:[%s1538_s15 + $0x90] sm:$0xff] %v842_v31  ;;  %vm774_vm10 = vcmp.ge.f32.partialorder %v742_v27, 0.0  ;;  %v813_v35 = vmul.f32 %v1524_v47, %v742_v27  ;;  %vm757_vm11 = vcmp.ge.f32.partialorder %v725_v32, 0.0  ;;  %v796_v36 = vmul.f32 %v1524_v47, %v725_v32  ;;  %v1148_v38 = vpop.f32.mrb[8].mxu0  ;;  %v1172_v40 = vpop.f32.mrb[8].mxu1 }
 0x100   : > { %vm773_vm12 = vcmp.ge.f32.partialorder %v741_v33, 0.0  ;;  %v812_v37 = vmul.f32 %v1524_v47, %v741_v33  ;;  %v829_v42 = vsel %vm758_vm9, %v726_v26, %v797_v34  ;;  %v689_v44 = vmul.f32 %v1145_v22, %v1509_v39  ;;  %v556_v46 = vpop.f32.mrb[9].mxu0  ;;  %v636_v48 = vpop.f32.mrb[9].mxu1 }
 0x101   : > { %v845_v43 = vsel %vm774_vm10, %v742_v27, %v813_v35  ;;  %v705_v45 = vmul.f32 %v1169_v23, %v1509_v39  ;;  %861 = vst [vmem:[%s1538_s15 + $0x28] sm:$0xff] %v829_v42  ;;  %v828_v49 = vsel %vm757_vm11, %v725_v32, %v796_v36  ;;  %v688_v51 = vmul.f32 %v1509_v39, %v546_v28 }
 0x102   : > { %877 = vst [vmem:[%s1538_s15 + $0xa8] sm:$0xff] %v845_v43  ;;  %v844_v50 = vsel %vm773_vm12, %v741_v33, %v812_v37  ;;  %v704_v52 = vmul.f32 %v1509_v39, %v626_v29  ;;  %860 = vst [vmem:[%s1538_s15 + $0x20] sm:$0xff] %v828_v49  ;;  %v728_v53 = vadd.f32 %v1515_v41, %v689_v44 }
 0x103   : > { %876 = vst [vmem:[%s1538_s15 + $0xa0] sm:$0xff] %v844_v50  ;;  %v744_v54 = vadd.f32 %v1515_v41, %v705_v45  ;;  %v691_v55 = vmul.f32 %v1148_v38, %v1509_v39  ;;  %v707_v56 = vmul.f32 %v1172_v40, %v1509_v39  ;;  %v727_v57 = vadd.f32 %v1515_v41, %v688_v51  ;;  %v1151_v61 = vpop.f32.mrb[10].mxu0  ;;  %v1175_v62 = vpop.f32.mrb[10].mxu1 }
 0x104   : > { %v743_v58 = vadd.f32 %v1515_v41, %v704_v52  ;;  %v690_v59 = vmul.f32 %v1509_v39, %v556_v46  ;;  %v706_v60 = vmul.f32 %v1509_v39, %v636_v48  ;;  %vm760_vm13 = vcmp.ge.f32.partialorder %v728_v53, 0.0  ;;  %v566_v1 = vpop.f32.mrb[11].mxu0  ;;  %v646_v2 = vpop.f32.mrb[11].mxu1 }
 0x105   : > { %v799_v63 = vmul.f32 %v1524_v47, %v728_v53  ;;  %vm776_vm14 = vcmp.ge.f32.partialorder %v744_v54, 0.0  ;;  %v815_v0 = vmul.f32 %v1524_v47, %v744_v54  ;;  %vm759_vm15 = vcmp.ge.f32.partialorder %v727_v57, 0.0 }
 0x106   : > { %v798_v3 = vmul.f32 %v1524_v47, %v727_v57  ;;  %vm775_vm0 = vcmp.ge.f32.partialorder %v743_v58, 0.0  ;;  %v814_v4 = vmul.f32 %v1524_v47, %v743_v58  ;;  %v730_v7 = vadd.f32 %v1515_v41, %v691_v55 }
 0x107   : > { %v831_v5 = vsel %vm760_vm13, %v728_v53, %v799_v63  ;;  %v847_v6 = vsel %vm776_vm14, %v744_v54, %v815_v0  ;;  %v746_v8 = vadd.f32 %v1515_v41, %v707_v56  ;;  %v729_v11 = vadd.f32 %v1515_v41, %v690_v59  ;;  %v1154_v13 = vpop.f32.mrb[12].mxu0  ;;  %v1178_v14 = vpop.f32.mrb[12].mxu1 }
 0x108   : > { %863 = vst [vmem:[%s1538_s15 + $0x38] sm:$0xff] %v831_v5  ;;  %879 = vst [vmem:[%s1538_s15 + $0xb8] sm:$0xff] %v847_v6  ;;  %v830_v9 = vsel %vm759_vm15, %v727_v57, %v798_v3  ;;  %v846_v10 = vsel %vm775_vm0, %v743_v58, %v814_v4  ;;  %v745_v12 = vadd.f32 %v1515_v41, %v706_v60  ;;  %vm762_vm1 = vcmp.ge.f32.partialorder %v730_v7, 0.0  ;;  %v576_v17 = vpop.f32.mrb[13].mxu0  ;;  %v656_v18 = vpop.f32.mrb[13].mxu1 }
 0x109   : > { %862 = vst [vmem:[%s1538_s15 + $0x30] sm:$0xff] %v830_v9  ;;  %878 = vst [vmem:[%s1538_s15 + $0xb0] sm:$0xff] %v846_v10  ;;  %v801_v15 = vmul.f32 %v1524_v47, %v730_v7  ;;  %vm778_vm2 = vcmp.ge.f32.partialorder %v746_v8, 0.0  ;;  %v817_v16 = vmul.f32 %v1524_v47, %v746_v8  ;;  %vm761_vm3 = vcmp.ge.f32.partialorder %v729_v11, 0.0 }
 0x10a   : > { %v800_v19 = vmul.f32 %v1524_v47, %v729_v11  ;;  %vm777_vm4 = vcmp.ge.f32.partialorder %v745_v12, 0.0  ;;  %v816_v20 = vmul.f32 %v1524_v47, %v745_v12  ;;  %v693_v23 = vmul.f32 %v1151_v61, %v1509_v39 }
 0x10b   : > { %v833_v21 = vsel %vm762_vm1, %v730_v7, %v801_v15  ;;  %v849_v22 = vsel %vm778_vm2, %v746_v8, %v817_v16  ;;  %v709_v24 = vmul.f32 %v1175_v62, %v1509_v39  ;;  %v692_v27 = vmul.f32 %v1509_v39, %v566_v1  ;;  %v1157_v29 = vpop.f32.mrb[14].mxu0  ;;  %v1181_v30 = vpop.f32.mrb[14].mxu1 }
 0x10c   : > { %865 = vst [vmem:[%s1538_s15 + $0x48] sm:$0xff] %v833_v21  ;;  %881 = vst [vmem:[%s1538_s15 + $0xc8] sm:$0xff] %v849_v22  ;;  %v832_v25 = vsel %vm761_vm3, %v729_v11, %v800_v19  ;;  %v848_v26 = vsel %vm777_vm4, %v745_v12, %v816_v20  ;;  %v708_v28 = vmul.f32 %v1509_v39, %v646_v2  ;;  %v586_v35 = vpop.f32.mrb[15].mxu0  ;;  %v666_v36 = vpop.f32.mrb[15].mxu1 }
 0x10d   : > { %864 = vst [vmem:[%s1538_s15 + $0x40] sm:$0xff] %v832_v25  ;;  %880 = vst [vmem:[%s1538_s15 + $0xc0] sm:$0xff] %v848_v26  ;;  %v732_v31 = vadd.f32 %v1515_v41, %v693_v23  ;;  %v748_v32 = vadd.f32 %v1515_v41, %v709_v24  ;;  %v695_v33 = vmul.f32 %v1154_v13, %v1509_v39 }
 0x10e   : > { %v711_v34 = vmul.f32 %v1178_v14, %v1509_v39  ;;  %v731_v37 = vadd.f32 %v1515_v41, %v692_v27  ;;  %v747_v38 = vadd.f32 %v1515_v41, %v708_v28  ;;  %v694_v40 = vmul.f32 %v1509_v39, %v576_v17 }
 0x10f   : > { %v710_v42 = vmul.f32 %v1509_v39, %v656_v18  ;;  %vm764_vm5 = vcmp.ge.f32.partialorder %v732_v31, 0.0  ;;  %v803_v43 = vmul.f32 %v1524_v47, %v732_v31  ;;  %vm780_vm6 = vcmp.ge.f32.partialorder %v748_v32, 0.0 }
 0x110   : > { %v819_v44 = vmul.f32 %v1524_v47, %v748_v32  ;;  %vm763_vm7 = vcmp.ge.f32.partialorder %v731_v37, 0.0  ;;  %v802_v45 = vmul.f32 %v1524_v47, %v731_v37  ;;  %vm779_vm8 = vcmp.ge.f32.partialorder %v747_v38, 0.0 }
 0x111   : > { %v818_v46 = vmul.f32 %v1524_v47, %v747_v38  ;;  %v835_v48 = vsel %vm764_vm5, %v732_v31, %v803_v43  ;;  %v734_v50 = vadd.f32 %v1515_v41, %v695_v33  ;;  %v750_v51 = vadd.f32 %v1515_v41, %v711_v34 }
 0x112   : > { %v851_v49 = vsel %vm780_vm6, %v748_v32, %v819_v44  ;;  %867 = vst [vmem:[%s1538_s15 + $0x58] sm:$0xff] %v835_v48  ;;  %v834_v52 = vsel %vm763_vm7, %v731_v37, %v802_v45  ;;  %v733_v54 = vadd.f32 %v1515_v41, %v694_v40  ;;  %v749_v55 = vadd.f32 %v1515_v41, %v710_v42 }
 0x113   : > { %883 = vst [vmem:[%s1538_s15 + $0xd8] sm:$0xff] %v851_v49  ;;  %v850_v53 = vsel %vm779_vm8, %v747_v38, %v818_v46  ;;  %866 = vst [vmem:[%s1538_s15 + $0x50] sm:$0xff] %v834_v52  ;;  %vm766_vm9 = vcmp.ge.f32.partialorder %v734_v50, 0.0  ;;  %v805_v56 = vmul.f32 %v1524_v47, %v734_v50  ;;  %vm782_vm10 = vcmp.ge.f32.partialorder %v750_v51, 0.0 }
 0x114   : > { %882 = vst [vmem:[%s1538_s15 + $0xd0] sm:$0xff] %v850_v53  ;;  %v821_v57 = vmul.f32 %v1524_v47, %v750_v51  ;;  %vm765_vm11 = vcmp.ge.f32.partialorder %v733_v54, 0.0  ;;  %v804_v58 = vmul.f32 %v1524_v47, %v733_v54  ;;  %vm781_vm12 = vcmp.ge.f32.partialorder %v749_v55, 0.0 }
 0x115   : > { %v820_v59 = vmul.f32 %v1524_v47, %v749_v55  ;;  %v837_v60 = vsel %vm766_vm9, %v734_v50, %v805_v56  ;;  %v697_v62 = vmul.f32 %v1157_v29, %v1509_v39  ;;  %v713_v63 = vmul.f32 %v1181_v30, %v1509_v39 }
 0x116   : > { %v853_v61 = vsel %vm782_vm10, %v750_v51, %v821_v57  ;;  %869 = vst [vmem:[%s1538_s15 + $0x68] sm:$0xff] %v837_v60  ;;  %v836_v0 = vsel %vm765_vm11, %v733_v54, %v804_v58  ;;  %v696_v2 = vmul.f32 %v1509_v39, %v586_v35  ;;  %v712_v3 = vmul.f32 %v1509_v39, %v666_v36 }
 0x117   : > { %885 = vst [vmem:[%s1538_s15 + $0xe8] sm:$0xff] %v853_v61  ;;  %v852_v1 = vsel %vm781_vm12, %v749_v55, %v820_v59  ;;  %868 = vst [vmem:[%s1538_s15 + $0x60] sm:$0xff] %v836_v0  ;;  %v736_v4 = vadd.f32 %v1515_v41, %v697_v62  ;;  %v752_v5 = vadd.f32 %v1515_v41, %v713_v63 }
 0x118   : > { %884 = vst [vmem:[%s1538_s15 + $0xe0] sm:$0xff] %v852_v1  ;;  %v735_v6 = vadd.f32 %v1515_v41, %v696_v2  ;;  %v751_v7 = vadd.f32 %v1515_v41, %v712_v3 }
 0x119   : > { %vm768_vm13 = vcmp.ge.f32.partialorder %v736_v4, 0.0  ;;  %v807_v8 = vmul.f32 %v1524_v47, %v736_v4  ;;  %vm784_vm14 = vcmp.ge.f32.partialorder %v752_v5, 0.0  ;;  %v823_v39 = vmul.f32 %v1524_v47, %v752_v5 }
 0x11a   : > { %vm767_vm15 = vcmp.ge.f32.partialorder %v735_v6, 0.0  ;;  %v806_v9 = vmul.f32 %v1524_v47, %v735_v6  ;;  %vm783_vm0 = vcmp.ge.f32.partialorder %v751_v7, 0.0  ;;  %v822_v10 = vmul.f32 %v1524_v47, %v751_v7 }
 0x11b   : > { %v839_v41 = vsel %vm768_vm13, %v736_v4, %v807_v8  ;;  %v855_v11 = vsel %vm784_vm14, %v752_v5, %v823_v39 }
 0x11c   : > { %871 = vst [vmem:[%s1538_s15 + $0x78] sm:$0xff] %v839_v41  ;;  %887 = vst [vmem:[%s1538_s15 + $0xf8] sm:$0xff] %v855_v11  ;;  %v838_v12 = vsel %vm767_vm15, %v735_v6, %v806_v9  ;;  %v854_v13 = vsel %vm783_vm0, %v751_v7, %v822_v10 }
 0x11d   : > { %870 = vst [vmem:[%s1538_s15 + $0x70] sm:$0xff] %v838_v12  ;;  %886 = vst [vmem:[%s1538_s15 + $0xf0] sm:$0xff] %v854_v13 }
 0x11e   : > { %1266 = shalt.err (!%p1263_p5)
}
 0x11f   : > { %s1267_s9 = scalar_lea.hbm %s1655_s25, 4096  ;;  %s1271_s13 = scalar_lea.hbm %s1716_s5, 8192 }
 0x120   : > { %p1268_p6 = scmp.ne.s32.totalorder %s1655_s25, %s1267_s9  ;;  %p1272_p10 = scmp.lt.u32.totalorder %s1655_s25, %s1716_s5 }
 0x121   : > { %p1273_p11 = scmp.lt.u32.totalorder %s1271_s13, %s1267_s9  ;;  %p1275_p13 = scmp.lt.u32.totalorder %s1267_s9, %s1655_s25 }
 0x122   : > { %p1269_p7 = pnand %p1268_p6, %p1406_p4 }
 0x123   : > { %p1274_p12 = por %p1273_p11, %p1272_p10 }
 0x124   : > { %p1270_p9 = pneg %p1269_p7 }
 0x125   : > { %p1276_p0 = por %p1275_p13, %p1274_p12 }
 0x127   : > { %p1277_p1 = pnand %p1276_p0, %p1270_p9 }
 0x129   : > { %1280 = shalt.err (!%p1277_p1)
}
 0x12a   : > { %s1334_s16 = smov 128   ;;  %s1335_s21 = smov 8  }
 0x12b   : > { %1196 = dma.vmem_to_hbm [thread:$0]  (%p1406_p4), %s1657_s17, 4096, %s1655_s25, %s1665_s27, %s1334_s16, %s1334_s16, %s1335_s21  }
 0x12c PF: > { %p1202_p2 = scmp.ge.s32.totalorder %s1331_s23, 2  ;;  %s919_s24 = sand.u32 1, %s1311_s18  }
 0x12d   : > { %s920_s29 = scalar_lea.sflag [#allocation3], %s919_s24 }
 0x12e   : > { %p1199_p3 = pnand %p1202_p2, %p1413_p8 }
 0x130   : > { %1306 = dma.done.wait (!%p1199_p3), %s920_s29, 4096  }
 0x131   : > { %1308 = vsyncadd (!%p1199_p3), %s920_s29, 4294963200  ;;  %s18_s23 = sadd.s32 1, %s1331_s23   ;;  %s1719_s18 = smov %s1315_s19 }
 0x132   : > { %p15_p5 = scmp.ge.s32.totalorder %s18_s23, 4   ;;  %s1720_s19 = smov %s1319_s20 }
 0x133   : > { %s1721_s20 = smov %s1419_s6  ;;  %s1722_s21 = smov %s1327_s22 }
 0x134   : > { %s1723_s22 = smov %s1725_s26  ;;  %17 = sbr.rel (!%p15_p5) target bundleno = 4 (0x4), region = 87 }
 0x13b   :  { %925 = vsyncpa [#allocation3], 1 }
 0x13c   :  { %927 = vsyncpa [#allocation3 + $0x1], 1 }

</bundles_post_ra>
